<compile_context>
chip_gen: v7x
topology: tpu7x:2x2x1
jax: 0.10.0
libtpu: 0.0.40
codegen_flags: <defaults>
</compile_context>

<pallas_src>
import functools

import jax
import jax.numpy as jnp
from jax.experimental import pallas as pl
from jax.experimental.pallas import tpu as pltpu


def _silu(x):
    return x * jax.nn.sigmoid(x)


def _gaussian_skip_mlp_kernel(num_blocks, block_out_dims, x_feat_dim,
                              xz_ref, w_in_ref, b_in_ref,
                              w_z_all_ref, b_inner_all_ref, b_comb_all_ref,
                              *refs):
    """One grid step computes one full SkipMLP (step 0 = mu, step 1 = logvar).

    refs = [w_inner_0, w_outer_0, ..., w_inner_{nb-1}, w_outer_{nb-1}, out_ref]
    Per-net parameter refs are already selected by the BlockSpec index_map.
    """
    out_ref = refs[-1]
    wts = refs[:-1]

    xz = xz_ref[...]                       # (B, 2*data_dim + latent_dim) f32
    z = xz[:, x_feat_dim:]                 # (B, latent_dim)  (static slice)

    # Input projection.
    h = _silu(jnp.dot(xz, w_in_ref[...],
                      preferred_element_type=jnp.float32) + b_in_ref[...])

    # All z-projections in one wide matmul, sliced per block below.
    zp_all = jnp.dot(z, w_z_all_ref[...],
                     preferred_element_type=jnp.float32)   # (B, sum(d_out))
    b_inner_all = b_inner_all_ref[...]     # (1, sum(d_out))
    b_comb_all = b_comb_all_ref[...]       # (1, sum(d_out)) == b_outer + b_z

    off = 0
    for i in range(num_blocks):
        d_out = block_out_dims[i]
        sl = slice(off, off + d_out)
        w_inner = wts[2 * i][...]
        w_outer = wts[2 * i + 1][...]

        inner = _silu(jnp.dot(h, w_inner, preferred_element_type=jnp.float32)
                      + b_inner_all[:, sl])
        h = (jnp.dot(inner, w_outer, preferred_element_type=jnp.float32)
             + b_comb_all[:, sl] + zp_all[:, sl])
        if i < num_blocks - 1:
            h = _silu(h)
        off += d_out

    out_ref[...] = h.astype(out_ref.dtype)


def gaussian_skip_mlp_forward(x, z, stacked_params, *, latent_dim,
                              hidden_dims, output_dim):
    """Fused mu/logvar forward: one pallas_call, grid=(2,) over the two nets."""
    batch = x.shape[0]
    x_feat = x.shape[1]                    # == 2 * data_dim
    xz = jnp.concatenate([x, z], axis=1)   # torch.hstack((x, z))

    num_blocks = len(hidden_dims)
    block_out_dims = tuple(hidden_dims[1:]) + (output_dim,)

    (w_in, b_in, w_z_all, b_inner_all, b_comb_all,
     w_inners, w_outers) = stacked_params

    inputs = [xz, w_in, b_in, w_z_all, b_inner_all, b_comb_all]
    for wi, wo in zip(w_inners, w_outers):
        inputs += [wi, wo]

    def shared_spec(a):
        # Same full block for both grid steps (stays resident in VMEM).
        return pl.BlockSpec(a.shape, lambda g, _nd=a.ndim: (0,) * _nd)

    def stacked_spec(a):
        # Leading axis picks mu (0) / logvar (1); squeezed inside the kernel.
        return pl.BlockSpec((None,) + a.shape[1:],
                            lambda g, _nd=a.ndim: (g,) + (0,) * (_nd - 1))

    in_specs = [shared_spec(xz)] + [stacked_spec(a) for a in inputs[1:]]
    out_spec = pl.BlockSpec((None, batch, output_dim), lambda g: (g, 0, 0))

    kernel = functools.partial(_gaussian_skip_mlp_kernel, num_blocks,
                               block_out_dims, x_feat)

    out = pl.pallas_call(
        kernel,
        out_shape=jax.ShapeDtypeStruct((2, batch, output_dim), jnp.float32),
        grid=(2,),  # step 0 -> mu net, step 1 -> logvar net
        in_specs=in_specs,
        out_specs=out_spec,
        compiler_params=pltpu.CompilerParams(
            dimension_semantics=("parallel",)),  # 2 TCs on v7x
    )(*inputs)

    return out[0], out[1]


# ----------------------------------------------------------------------------
# Parameter construction / packing
# ----------------------------------------------------------------------------

def _init_linear(key, d_in, d_out):
    """Deterministic init matching nn.Linear's uniform(-1/sqrt(in), 1/sqrt(in))."""
    kw, kb = jax.random.split(key)
    bound = 1.0 / jnp.sqrt(jnp.float32(d_in))
    w = jax.random.uniform(kw, (d_in, d_out), jnp.float32, -bound, bound)
    b = jax.random.uniform(kb, (1, d_out), jnp.float32, -bound, bound)
    return w, b


def init_skip_mlp_params(key, data_dim, latent_dim, hidden_dims, output_dim):
    """Raw per-layer params for one SkipMLP (weights stored as (in, out))."""
    key, sub = jax.random.split(key)
    w_in, b_in = _init_linear(sub, 2 * data_dim + latent_dim, hidden_dims[0])

    block_io = [(hidden_dims[i], hidden_dims[i + 1])
                for i in range(len(hidden_dims) - 1)]
    block_io += [(hidden_dims[-1], output_dim)]

    blocks = []
    for d_in, d_out in block_io:
        key, k1, k2, k3 = jax.random.split(key, 4)
        wi, bi = _init_linear(k1, d_in, d_out)        # inner_linear_h
        wo, bo = _init_linear(k2, d_out, d_out)       # outer_linear_h
        wz, bz = _init_linear(k3, latent_dim, d_out)  # linear_z
        blocks.append((wi, bi, wo, bo, wz, bz))
    return dict(w_in=w_in, b_in=b_in, blocks=blocks)


def pack_gaussian_params(mu_p, lv_p):
    """Fold b_outer+b_z, concat the z projections / biases, and stack mu & logvar
    params along a new leading axis so a single 2-wide grid covers both nets."""
    def pack_one(p):
        w_z_all = jnp.concatenate([blk[4] for blk in p["blocks"]], axis=1)
        b_inner_all = jnp.concatenate([blk[1] for blk in p["blocks"]], axis=1)
        b_comb_all = jnp.concatenate([blk[3] + blk[5] for blk in p["blocks"]],
                                     axis=1)
        w_inners = [blk[0] for blk in p["blocks"]]
        w_outers = [blk[2] for blk in p["blocks"]]
        return (p["w_in"], p["b_in"], w_z_all, b_inner_all, b_comb_all,
                w_inners, w_outers)

    mu = pack_one(mu_p)
    lv = pack_one(lv_p)
    stack = lambda a, b: jnp.stack([a, b], axis=0)
    return (stack(mu[0], lv[0]),                                   # w_in
            stack(mu[1], lv[1]),                                   # b_in
            stack(mu[2], lv[2]),                                   # w_z_all
            stack(mu[3], lv[3]),                                   # b_inner_all
            stack(mu[4], lv[4]),                                   # b_comb_all
            [stack(a, b) for a, b in zip(mu[5], lv[5])],           # w_inners
            [stack(a, b) for a, b in zip(mu[6], lv[6])])           # w_outers


def skip_mlp_ref(x, z, p):
    """Pure-JAX reference matching the PyTorch SkipMLP.forward."""
    xz = jnp.concatenate([x, z], axis=1)
    h = _silu(xz @ p["w_in"] + p["b_in"])
    nb = len(p["blocks"])
    for i, (wi, bi, wo, bo, wz, bz) in enumerate(p["blocks"]):
        h = _silu(h @ wi + bi) @ wo + bo + z @ wz + bz
        if i < nb - 1:
            h = _silu(h)
    return h


if __name__ == "__main__":
    data_dim = 4
    latent_dim = 8
    hidden_dims = [32, 32]
    output_dim = 16
    batch = 8

    key = jax.random.PRNGKey(0)
    kx, kz, kmu, klv = jax.random.split(key, 4)

    # forward(x, z) does hstack((x, z)) into a (2*data_dim + latent_dim) Linear,
    # so x has 2*data_dim features and z has latent_dim features.
    x = jax.random.normal(kx, (batch, 2 * data_dim), jnp.float32)
    z = jax.random.normal(kz, (batch, latent_dim), jnp.float32)

    mu_p = init_skip_mlp_params(kmu, data_dim, latent_dim, hidden_dims,
                                output_dim)
    lv_p = init_skip_mlp_params(klv, data_dim, latent_dim, hidden_dims,
                                output_dim)
    packed = pack_gaussian_params(mu_p, lv_p)

    mu, logvar = gaussian_skip_mlp_forward(
        x, z, packed, latent_dim=latent_dim, hidden_dims=hidden_dims,
        output_dim=output_dim)
    jax.block_until_ready((mu, logvar))

    assert mu.shape == (batch, output_dim)
    assert logvar.shape == (batch, output_dim)

    # Sanity check against a pure-JAX reference of the original module.
    mu_ref = skip_mlp_ref(x, z, mu_p)
    lv_ref = skip_mlp_ref(x, z, lv_p)
    assert jnp.allclose(mu, mu_ref, atol=1e-2, rtol=1e-2)
    assert jnp.allclose(logvar, lv_ref, atol=1e-2, rtol=1e-2)

    print("KERNEL_OK")
</pallas_src>

<mosaic_0001>
module attributes {stable_mosaic.version = 11 : i64} {
  func.func @_gaussian_skip_mlp_kernel(%arg0: i32, %arg1: memref<8x16xf32, #tpu.memory_space<vmem>>, %arg2: memref<1x16x32xf32, #tpu.memory_space<vmem>>, %arg3: memref<1x1x32xf32, #tpu.memory_space<vmem>>, %arg4: memref<1x8x48xf32, #tpu.memory_space<vmem>>, %arg5: memref<1x1x48xf32, #tpu.memory_space<vmem>>, %arg6: memref<1x1x48xf32, #tpu.memory_space<vmem>>, %arg7: memref<1x32x32xf32, #tpu.memory_space<vmem>>, %arg8: memref<1x32x32xf32, #tpu.memory_space<vmem>>, %arg9: memref<1x32x16xf32, #tpu.memory_space<vmem>>, %arg10: memref<1x16x16xf32, #tpu.memory_space<vmem>>, %arg11: memref<1x8x16xf32, #tpu.memory_space<vmem>>) attributes {dimension_semantics = [#tpu.dimension_semantics<parallel>], iteration_bounds = array<i64: 2>, scalar_prefetch = 0 : i64, scratch_operands = 0 : i64, tpu.core_type = #tpu.core_type<tc>, window_params = [{pipeline_mode = #tpu.pipeline_mode<synchronous>, transform_indices = @transform_0, window_bounds = array<i64: 8, 16>}, {transform_indices = @transform_1, window_bounds = array<i64: 1, 16, 32>}, {transform_indices = @transform_2, window_bounds = array<i64: 1, 1, 32>}, {transform_indices = @transform_3, window_bounds = array<i64: 1, 8, 48>}, {transform_indices = @transform_4, window_bounds = array<i64: 1, 1, 48>}, {transform_indices = @transform_5, window_bounds = array<i64: 1, 1, 48>}, {transform_indices = @transform_6, window_bounds = array<i64: 1, 32, 32>}, {transform_indices = @transform_7, window_bounds = array<i64: 1, 32, 32>}, {transform_indices = @transform_8, window_bounds = array<i64: 1, 32, 16>}, {transform_indices = @transform_9, window_bounds = array<i64: 1, 16, 16>}, {transform_indices = @transform_10, window_bounds = array<i64: 1, 8, 16>}]} {
    %c0 = arith.constant 0 : index
    %c0_0 = arith.constant 0 : index
    %0 = vector.load %arg1[%c0, %c0_0] : memref<8x16xf32, #tpu.memory_space<vmem>>, vector<8x16xf32>
    %1 = vector.extract_strided_slice %0 {offsets = [0, 8], sizes = [8, 8], strides = [1, 1]} : vector<8x16xf32> to vector<8x8xf32>
    %c0_1 = arith.constant 0 : index
    %c0_2 = arith.constant 0 : index
    %c0_3 = arith.constant 0 : index
    %2 = vector.load %arg2[%c0_1, %c0_2, %c0_3] : memref<1x16x32xf32, #tpu.memory_space<vmem>>, vector<1x16x32xf32>
    %3 = vector.shape_cast %2 : vector<1x16x32xf32> to vector<16x32xf32>
    %cst = arith.constant dense<0.000000e+00> : vector<8x32xf32>
    %4 = tpu.matmul %0, %3, %cst {dimension_numbers = #tpu.dot_dimension_numbers<[1], [0], [0], [1], [0, 0, 1, 1], [], []>} : vector<8x16xf32>, vector<16x32xf32>, vector<8x32xf32> -> vector<8x32xf32>
    %c0_4 = arith.constant 0 : index
    %c0_5 = arith.constant 0 : index
    %c0_6 = arith.constant 0 : index
    %5 = vector.load %arg3[%c0_4, %c0_5, %c0_6] : memref<1x1x32xf32, #tpu.memory_space<vmem>>, vector<1x1x32xf32>
    %6 = vector.shape_cast %5 : vector<1x1x32xf32> to vector<1x32xf32>
    %7 = vector.broadcast %6 : vector<1x32xf32> to vector<8x32xf32>
    %8 = arith.addf %4, %7 : vector<8x32xf32>
    %9 = arith.negf %8 : vector<8x32xf32>
    %10 = math.exp %9 : vector<8x32xf32>
    %cst_7 = arith.constant 1.000000e+00 : f32
    %11 = vector.broadcast %cst_7 : f32 to vector<8x32xf32>
    %12 = arith.addf %11, %10 : vector<8x32xf32>
    %13 = arith.divf %11, %12 : vector<8x32xf32>
    %14 = arith.mulf %8, %13 : vector<8x32xf32>
    %c0_8 = arith.constant 0 : index
    %c0_9 = arith.constant 0 : index
    %c0_10 = arith.constant 0 : index
    %15 = vector.load %arg4[%c0_8, %c0_9, %c0_10] : memref<1x8x48xf32, #tpu.memory_space<vmem>>, vector<1x8x48xf32>
    %16 = vector.shape_cast %15 : vector<1x8x48xf32> to vector<8x48xf32>
    %cst_11 = arith.constant dense<0.000000e+00> : vector<8x48xf32>
    %17 = tpu.matmul %1, %16, %cst_11 {dimension_numbers = #tpu.dot_dimension_numbers<[1], [0], [0], [1], [0, 0, 1, 1], [], []>} : vector<8x8xf32>, vector<8x48xf32>, vector<8x48xf32> -> vector<8x48xf32>
    %c0_12 = arith.constant 0 : index
    %c0_13 = arith.constant 0 : index
    %c0_14 = arith.constant 0 : index
    %18 = vector.load %arg5[%c0_12, %c0_13, %c0_14] : memref<1x1x48xf32, #tpu.memory_space<vmem>>, vector<1x1x48xf32>
    %19 = vector.shape_cast %18 : vector<1x1x48xf32> to vector<1x48xf32>
    %c0_15 = arith.constant 0 : index
    %c0_16 = arith.constant 0 : index
    %c0_17 = arith.constant 0 : index
    %20 = vector.load %arg6[%c0_15, %c0_16, %c0_17] : memref<1x1x48xf32, #tpu.memory_space<vmem>>, vector<1x1x48xf32>
    %21 = vector.shape_cast %20 : vector<1x1x48xf32> to vector<1x48xf32>
    %c0_18 = arith.constant 0 : index
    %c0_19 = arith.constant 0 : index
    %c0_20 = arith.constant 0 : index
    %22 = vector.load %arg7[%c0_18, %c0_19, %c0_20] : memref<1x32x32xf32, #tpu.memory_space<vmem>>, vector<1x32x32xf32>
    %23 = vector.shape_cast %22 : vector<1x32x32xf32> to vector<32x32xf32>
    %c0_21 = arith.constant 0 : index
    %c0_22 = arith.constant 0 : index
    %c0_23 = arith.constant 0 : index
    %24 = vector.load %arg8[%c0_21, %c0_22, %c0_23] : memref<1x32x32xf32, #tpu.memory_space<vmem>>, vector<1x32x32xf32>
    %25 = vector.shape_cast %24 : vector<1x32x32xf32> to vector<32x32xf32>
    %cst_24 = arith.constant dense<0.000000e+00> : vector<8x32xf32>
    %26 = tpu.matmul %14, %23, %cst_24 {dimension_numbers = #tpu.dot_dimension_numbers<[1], [0], [0], [1], [0, 0, 1, 1], [], []>} : vector<8x32xf32>, vector<32x32xf32>, vector<8x32xf32> -> vector<8x32xf32>
    %27 = vector.extract_strided_slice %19 {offsets = [0, 0], sizes = [1, 32], strides = [1, 1]} : vector<1x48xf32> to vector<1x32xf32>
    %28 = vector.broadcast %27 : vector<1x32xf32> to vector<8x32xf32>
    %29 = arith.addf %26, %28 : vector<8x32xf32>
    %30 = arith.negf %29 : vector<8x32xf32>
    %31 = math.exp %30 : vector<8x32xf32>
    %cst_25 = arith.constant 1.000000e+00 : f32
    %32 = vector.broadcast %cst_25 : f32 to vector<8x32xf32>
    %33 = arith.addf %32, %31 : vector<8x32xf32>
    %34 = arith.divf %32, %33 : vector<8x32xf32>
    %35 = arith.mulf %29, %34 : vector<8x32xf32>
    %cst_26 = arith.constant dense<0.000000e+00> : vector<8x32xf32>
    %36 = tpu.matmul %35, %25, %cst_26 {dimension_numbers = #tpu.dot_dimension_numbers<[1], [0], [0], [1], [0, 0, 1, 1], [], []>} : vector<8x32xf32>, vector<32x32xf32>, vector<8x32xf32> -> vector<8x32xf32>
    %37 = vector.extract_strided_slice %21 {offsets = [0, 0], sizes = [1, 32], strides = [1, 1]} : vector<1x48xf32> to vector<1x32xf32>
    %38 = vector.broadcast %37 : vector<1x32xf32> to vector<8x32xf32>
    %39 = arith.addf %36, %38 : vector<8x32xf32>
    %40 = vector.extract_strided_slice %17 {offsets = [0, 0], sizes = [8, 32], strides = [1, 1]} : vector<8x48xf32> to vector<8x32xf32>
    %41 = arith.addf %39, %40 : vector<8x32xf32>
    %42 = arith.negf %41 : vector<8x32xf32>
    %43 = math.exp %42 : vector<8x32xf32>
    %cst_27 = arith.constant 1.000000e+00 : f32
    %44 = vector.broadcast %cst_27 : f32 to vector<8x32xf32>
    %45 = arith.addf %44, %43 : vector<8x32xf32>
    %46 = arith.divf %44, %45 : vector<8x32xf32>
    %47 = arith.mulf %41, %46 : vector<8x32xf32>
    %c0_28 = arith.constant 0 : index
    %c0_29 = arith.constant 0 : index
    %c0_30 = arith.constant 0 : index
    %48 = vector.load %arg9[%c0_28, %c0_29, %c0_30] : memref<1x32x16xf32, #tpu.memory_space<vmem>>, vector<1x32x16xf32>
    %49 = vector.shape_cast %48 : vector<1x32x16xf32> to vector<32x16xf32>
    %c0_31 = arith.constant 0 : index
    %c0_32 = arith.constant 0 : index
    %c0_33 = arith.constant 0 : index
    %50 = vector.load %arg10[%c0_31, %c0_32, %c0_33] : memref<1x16x16xf32, #tpu.memory_space<vmem>>, vector<1x16x16xf32>
    %51 = vector.shape_cast %50 : vector<1x16x16xf32> to vector<16x16xf32>
    %cst_34 = arith.constant dense<0.000000e+00> : vector<8x16xf32>
    %52 = tpu.matmul %47, %49, %cst_34 {dimension_numbers = #tpu.dot_dimension_numbers<[1], [0], [0], [1], [0, 0, 1, 1], [], []>} : vector<8x32xf32>, vector<32x16xf32>, vector<8x16xf32> -> vector<8x16xf32>
    %53 = vector.extract_strided_slice %19 {offsets = [0, 32], sizes = [1, 16], strides = [1, 1]} : vector<1x48xf32> to vector<1x16xf32>
    %54 = vector.broadcast %53 : vector<1x16xf32> to vector<8x16xf32>
    %55 = arith.addf %52, %54 : vector<8x16xf32>
    %56 = arith.negf %55 : vector<8x16xf32>
    %57 = math.exp %56 : vector<8x16xf32>
    %cst_35 = arith.constant 1.000000e+00 : f32
    %58 = vector.broadcast %cst_35 : f32 to vector<8x16xf32>
    %59 = arith.addf %58, %57 : vector<8x16xf32>
    %60 = arith.divf %58, %59 : vector<8x16xf32>
    %61 = arith.mulf %55, %60 : vector<8x16xf32>
    %cst_36 = arith.constant dense<0.000000e+00> : vector<8x16xf32>
    %62 = tpu.matmul %61, %51, %cst_36 {dimension_numbers = #tpu.dot_dimension_numbers<[1], [0], [0], [1], [0, 0, 1, 1], [], []>} : vector<8x16xf32>, vector<16x16xf32>, vector<8x16xf32> -> vector<8x16xf32>
    %63 = vector.extract_strided_slice %21 {offsets = [0, 32], sizes = [1, 16], strides = [1, 1]} : vector<1x48xf32> to vector<1x16xf32>
    %64 = vector.broadcast %63 : vector<1x16xf32> to vector<8x16xf32>
    %65 = arith.addf %62, %64 : vector<8x16xf32>
    %66 = vector.extract_strided_slice %17 {offsets = [0, 32], sizes = [8, 16], strides = [1, 1]} : vector<8x48xf32> to vector<8x16xf32>
    %67 = arith.addf %65, %66 : vector<8x16xf32>
    %c0_37 = arith.constant 0 : index
    %c0_38 = arith.constant 0 : index
    %c0_39 = arith.constant 0 : index
    %68 = vector.load %arg11[%c0_37, %c0_38, %c0_39] : memref<1x8x16xf32, #tpu.memory_space<vmem>>, vector<1x8x16xf32>
    %69 = vector.shape_cast %68 : vector<1x8x16xf32> to vector<8x16xf32>
    %70 = vector.shape_cast %67 : vector<8x16xf32> to vector<1x8x16xf32>
    tpu.vector_store %arg11[%c0_37, %c0_38, %c0_39], %70 {strides = array<i32>} : memref<1x8x16xf32, #tpu.memory_space<vmem>>, vector<1x8x16xf32>,
    return
  }
  func.func @transform_0(%arg0: i32) -> (i32, i32) {
    %c0_i32 = arith.constant 0 : i32
    %c0_i32_0 = arith.constant 0 : i32
    %c0_i32_1 = arith.constant 0 : i32
    return %c0_i32, %c0_i32_0 : i32, i32
  }
  func.func @transform_1(%arg0: i32) -> (i32, i32, i32) {
    %c0_i32 = arith.constant 0 : i32
    %c0_i32_0 = arith.constant 0 : i32
    %c0_i32_1 = arith.constant 0 : i32
    return %arg0, %c0_i32, %c0_i32_0 : i32, i32, i32
  }
  func.func @transform_2(%arg0: i32) -> (i32, i32, i32) {
    %c0_i32 = arith.constant 0 : i32
    %c0_i32_0 = arith.constant 0 : i32
    %c0_i32_1 = arith.constant 0 : i32
    return %arg0, %c0_i32, %c0_i32_0 : i32, i32, i32
  }
  func.func @transform_3(%arg0: i32) -> (i32, i32, i32) {
    %c0_i32 = arith.constant 0 : i32
    %c0_i32_0 = arith.constant 0 : i32
    %c0_i32_1 = arith.constant 0 : i32
    return %arg0, %c0_i32, %c0_i32_0 : i32, i32, i32
  }
  func.func @transform_4(%arg0: i32) -> (i32, i32, i32) {
    %c0_i32 = arith.constant 0 : i32
    %c0_i32_0 = arith.constant 0 : i32
    %c0_i32_1 = arith.constant 0 : i32
    return %arg0, %c0_i32, %c0_i32_0 : i32, i32, i32
  }
  func.func @transform_5(%arg0: i32) -> (i32, i32, i32) {
    %c0_i32 = arith.constant 0 : i32
    %c0_i32_0 = arith.constant 0 : i32
    %c0_i32_1 = arith.constant 0 : i32
    return %arg0, %c0_i32, %c0_i32_0 : i32, i32, i32
  }
  func.func @transform_6(%arg0: i32) -> (i32, i32, i32) {
    %c0_i32 = arith.constant 0 : i32
    %c0_i32_0 = arith.constant 0 : i32
    %c0_i32_1 = arith.constant 0 : i32
    return %arg0, %c0_i32, %c0_i32_0 : i32, i32, i32
  }
  func.func @transform_7(%arg0: i32) -> (i32, i32, i32) {
    %c0_i32 = arith.constant 0 : i32
    %c0_i32_0 = arith.constant 0 : i32
    %c0_i32_1 = arith.constant 0 : i32
    return %arg0, %c0_i32, %c0_i32_0 : i32, i32, i32
  }
  func.func @transform_8(%arg0: i32) -> (i32, i32, i32) {
    %c0_i32 = arith.constant 0 : i32
    %c0_i32_0 = arith.constant 0 : i32
    %c0_i32_1 = arith.constant 0 : i32
    return %arg0, %c0_i32, %c0_i32_0 : i32, i32, i32
  }
  func.func @transform_9(%arg0: i32) -> (i32, i32, i32) {
    %c0_i32 = arith.constant 0 : i32
    %c0_i32_0 = arith.constant 0 : i32
    %c0_i32_1 = arith.constant 0 : i32
    return %arg0, %c0_i32, %c0_i32_0 : i32, i32, i32
  }
  func.func @transform_10(%arg0: i32) -> (i32, i32, i32) {
    %c0_i32 = arith.constant 0 : i32
    %c0_i32_0 = arith.constant 0 : i32
    %c0_i32_1 = arith.constant 0 : i32
    return %arg0, %c0_i32, %c0_i32_0 : i32, i32, i32
  }
}

</mosaic_0001>

<bundles_post_ra>
// kernel: tpu_custom_call.1
= control target key start
LH: loop header
LB: loop body
LE: loop exit
PB: predicated region body
PF: predicated region fallthrough
CT: control target
= control target key end

     0   :  { %s2227_s0 = inlined_call_operand.hbm [shape: f32[8,16], index: 0, kind: input, shape index: {}]   ;;  %s2228_s1 = inlined_call_operand.vmem [shape: f32[2,16,32], index: 1, kind: input, shape index: {}]   ;;  %s2229_s2 = inlined_call_operand.vmem [shape: f32[2,1,32], index: 2, kind: input, shape index: {}]   ;;  %s2230_s3 = inlined_call_operand.hbm [shape: f32[2,8,48], index: 3, kind: input, shape index: {}]   ;;  %s2231_s4 = inlined_call_operand.hbm [shape: f32[2,1,48], index: 4, kind: input, shape index: {}]   ;;  %s2232_s5 = inlined_call_operand.hbm [shape: f32[2,1,48], index: 5, kind: input, shape index: {}]   ;;  %s2233_s6 = inlined_call_operand.vmem [shape: f32[2,32,32], index: 6, kind: input, shape index: {}]   ;;  %s2234_s7 = inlined_call_operand.hbm [shape: f32[2,32,32], index: 7, kind: input, shape index: {}]   ;;  %s2235_s8 = inlined_call_operand.vmem [shape: f32[2,32,16], index: 8, kind: input, shape index: {}]   ;;  %s2236_s9 = inlined_call_operand.vmem [shape: f32[2,16,16], index: 9, kind: input, shape index: {}]   ;;  %s2237_s10 = inlined_call_operand.hbm [shape: f32[2,8,16], index: 10, kind: output, shape index: {}]  }
   0x1   :  { %2255 = sst [smem:[#allocation21_spill]] %s2230_s3 }
   0x2   :  { %2256 = sst [smem:[#allocation22_spill]] %s2231_s4 }
   0x3   :  { %2257 = sst [smem:[#allocation23_spill]] %s2232_s5 }
   0x4   :  { %2258 = sst [smem:[#allocation24_spill]] %s2237_s10 }
   0x5   :  { %15 = vsyncpa [#allocation3], 0 }
   0x6   :  { %16 = vsyncpa [#allocation6], 0 }
   0x7   :  { %18 = vsyncpa [#allocation6 + $0x1], 0 }
   0x8   :  { %19 = vsyncpa [#allocation9], 0 }
   0x9   :  { %21 = vsyncpa [#allocation9 + $0x1], 0 }
   0xa   :  { %22 = vsyncpa [#allocation4], 0 }
   0xb   :  { %24 = vsyncpa [#allocation4 + $0x1], 0  ;;  %s1848_s13 = smov 0   ;;  %s1850_s14 = smov 0  }
   0xc   :  { %s1852_s15 = smov 0   ;;  %s1854_s16 = smov 0  }
   0xd LB: > { %2259 = sst [smem:[#allocation16_spill]] %s1766_s13  ;;  %s1869_s17 = sadd.s32 1, %s1778_s16   ;;  %s1778_s16 = sphi %s1854_s16, %s2295_s16   ;;  %s1774_s15 = sphi %s1852_s15, %s2297_s15   ;;  %s1770_s14 = sphi %s1850_s14, %s2299_s14   ;;  %s1766_s13 = sphi %s1848_s13, %s2298_s13  }
   0xe   : > { %2260 = sst [smem:[#allocation17_spill]] %s1774_s15  ;;  %s110_s18 = sadd.s32 1, %s1774_s15 }
   0xf   : > { %2261 = sst [smem:[#allocation18_spill]] %s1869_s17  ;;  %s107_s19 = ssub.s32 %s1778_s16, %s1869_s17 }
  0x10   : > { %p2239_p0 = scmp.ne.s32.totalorder %s1774_s15, %s1770_s14  ;;  %p108_p1 = scmp.eq.s32.totalorder %s107_s19, 0 }
  0x11   : > { %p118_p2 = scmp.eq.s32.totalorder %s1778_s16, 0  ;;  %p1497_p4 = scmp.lt.s32.totalorder %s1778_s16, 2 }
  0x12   : > { %s1880_s20 = scalar_select %p108_p1, %s1774_s15, %s110_s18  }
  0x13   : > { %p119_p5 = por %p118_p2, %p2239_p0  ;;  %s2238_s21 = sand.u32 1, %s1778_s16  }
  0x14   : > { %2262 = sst [smem:[#allocation19_spill]] %s1880_s20  ;;  %s1887_s22 = sand.u32 1, %s1774_s15  }
  0x15   : > { %s1320_s23 = sshll.u32 %s1887_s22, 3  ;;  %s1321_s24 = sshll.u32 %s1778_s16, 7 }
  0x16   : > { %s2263_s3 = sld [smem:[#allocation21_spill]]  ;;  %s358_s28 = scalar_lea.vmem [#allocation5], %s1320_s23 }
  0x17   : > { %s365_s29 = sshll.u32 %s358_s28, 4  ;;  %p1896_p6 = pnand %p1497_p4, %p119_p5  ;;  %s1900_s29 = int_to_ptr.vmem [resolvable:$true] %s365_s29 }
  0x18   : > { %s1322_s12 = sshll.u32 %s1778_s16, 4  ;;  %s1906_s18 = scalar_lea.sflag [#allocation6], %s2238_s21 }
  0x19   : > { %s2264_s30 = scalar_select %p1896_p6, 1, 0 }
  0x1a   : > { %p1912_p8 = pneg %p1896_p6 }
  0x1c   : > { %s1894_s27 = scalar_lea.hbm %s2263_s3, %s1321_s24  ;;  %s1561_s26 = scalar_lea.hbm %s2263_s3, 256 }
  0x1d   : > { %s1556_s19 = scalar_lea.hbm %s1894_s27, 128  ;;  %p1562_p11 = scmp.lt.u32.totalorder %s1894_s27, %s2263_s3 }
  0x1e   : > { %p1557_p7 = scmp.ne.s32.totalorder %s1894_s27, %s1556_s19  ;;  %p1563_p12 = scmp.lt.u32.totalorder %s1561_s26, %s1556_s19 }
  0x1f   : > { %s2265_s24 = scalar_select %p1912_p8, 1, 0 }
  0x20   : > { %p1559_p9 = pnand %p1912_p8, %p1557_p7  ;;  %p1564_p13 = por %p1563_p12, %p1562_p11 }
  0x21   : > { %p1565_p1 = scmp.lt.u32.totalorder %s1556_s19, %s1894_s27 }
  0x22   : > { %p1560_p10 = pneg %p1559_p9 }
  0x23   : > { %p1566_p2 = por %p1565_p1, %p1564_p13 }
  0x25   : > { %p1567_p4 = pnand %p1566_p2, %p1560_p10 }
  0x27   : > { %1570 = shalt.err (!%p1567_p4)
}
  0x28   : > { %s1571_s21 = scalar_lea.vmem %s1900_s29, 128  ;;  %s1780_s23 = smov [#allocation5]  }
  0x29   : > { %p1572_p5 = scmp.ne.s32.totalorder %s1900_s29, %s1571_s21  ;;  %s1576_s25 = sshll.u32 %s1780_s23, 4  ;;  %s1577_s25 = int_to_ptr.vmem [resolvable:$false] %s1576_s25 }
  0x2a   : > { %s1578_s11 = scalar_lea.vmem %s1577_s25, 256  ;;  %p1579_p3 = scmp.lt.s32.totalorder %s1900_s29, %s1577_s25 }
  0x2b   : > { %p1574_p7 = pnand %p1572_p5, %p1912_p8  ;;  %p1580_p0 = scmp.lt.s32.totalorder %s1578_s11, %s1571_s21 }
  0x2d   : > { %p1575_p9 = pneg %p1574_p7  ;;  %p1581_p11 = por %p1580_p0, %p1579_p3 }
  0x2f   : > { %p1582_p12 = pnand %p1581_p11, %p1575_p9 }
  0x31   : > { %1585 = shalt.err (!%p1582_p12)
}
  0x32   : > { %1482 = dma.hbm_to_vmem [thread:$0]  (!%p1896_p6), %s1894_s27, 128, %s1900_s29, %s1906_s18  }
  0x33   : > { %s2266_s4 = sld [smem:[#allocation22_spill]]  ;;  %s2267_s5 = sld [smem:[#allocation23_spill]] }
  0x34   : > { %s392_s11 = scalar_lea.vmem [#allocation8], %s1887_s22  ;;  %s2268_s27 = sand.u32 1, %s1778_s16  }
  0x35   : > { %s399_s3 = sshll.u32 %s392_s11, 4  ;;  %s1953_s29 = scalar_lea.sflag [#allocation9], %s2268_s27  ;;  %s400_s3 = int_to_ptr.vmem [resolvable:$true] %s399_s3 }
  0x39   : > { %s1941_s28 = scalar_lea.hbm %s2266_s4, %s1322_s12  ;;  %s1948_s25 = scalar_lea.hbm %s2267_s5, %s1322_s12 }
  0x3a   : > { %s1586_s20 = scalar_lea.hbm %s1948_s25, 16  ;;  %s1591_s12 = scalar_lea.hbm %s2267_s5, 32 }
  0x3b   : > { %p1587_p0 = scmp.ne.s32.totalorder %s1948_s25, %s1586_s20  ;;  %p1592_p13 = scmp.lt.u32.totalorder %s1948_s25, %s2267_s5 }
  0x3c   : > { %p1593_p1 = scmp.lt.u32.totalorder %s1591_s12, %s1586_s20  ;;  %p1595_p4 = scmp.lt.u32.totalorder %s1586_s20, %s1948_s25 }
  0x3d   : > { %p1589_p3 = pnand %p1587_p0, %p1912_p8 }
  0x3e   : > { %p1594_p2 = por %p1593_p1, %p1592_p13 }
  0x3f   : > { %p1590_p10 = pneg %p1589_p3 }
  0x40   : > { %p1596_p5 = por %p1595_p4, %p1594_p2 }
  0x42   : > { %p1597_p7 = pnand %p1596_p5, %p1590_p10 }
  0x44   : > { %1600 = shalt.err (!%p1597_p7)
}
  0x45   : > { %s1601_s11 = scalar_lea.vmem %s400_s3, 16  ;;  %s1781_s27 = smov [#allocation8]  }
  0x46   : > { %p1602_p9 = scmp.ne.s32.totalorder %s400_s3, %s1601_s11  ;;  %s1606_s17 = sshll.u32 %s1781_s27, 4  ;;  %s1607_s17 = int_to_ptr.vmem [resolvable:$false] %s1606_s17 }
  0x47   : > { %s1608_s19 = scalar_lea.vmem %s1607_s17, 32  ;;  %p1609_p0 = scmp.lt.s32.totalorder %s400_s3, %s1607_s17 }
  0x48   : > { %p1604_p11 = pnand %p1602_p9, %p1912_p8  ;;  %p1610_p3 = scmp.lt.s32.totalorder %s1608_s19, %s1601_s11 }
  0x4a   : > { %p1605_p12 = pneg %p1604_p11  ;;  %p1611_p6 = por %p1610_p3, %p1609_p0 }
  0x4c   : > { %p1612_p1 = pnand %p1611_p6, %p1605_p12 }
  0x4e   : > { %1615 = shalt.err (!%p1612_p1)
}
  0x4f   : > { %p2269_p13 = scmp.ne.s32.totalorder %s2264_s30, 0  ;;  %s1974_s20 = sadd.s32 4294967295, %s1778_s16  }
  0x50   : > { %s1316_s17 = sadd.s32 4294967294, %s1778_s16   ;;  %p123_p6 = scmp.ne.s32.totalorder %s1770_s14, %s1766_s13 }
  0x51   : > { %1488 = dma.hbm_to_vmem [thread:$0]  (!%p2269_p13), %s1948_s25, 16, %s400_s3, %s1953_s29  }
  0x52   : > { %p2247_p10 = scmp.eq.s32.totalorder %s1974_s20, 0  ;;  %p303_p2 = scmp.eq.s32.totalorder %s1974_s20, 1 }
  0x53   : > { %p309_p4 = scmp.eq.s32.totalorder %s1316_s17, 1  ;;  %p1317_p7 = scmp.ge.s32.totalorder %s1778_s16, 1 }
  0x54   : > { %p1983_p5 = por %p2247_p10, %p123_p6  ;;  %p2271_p9 = scmp.ne.s32.totalorder %s1774_s15, %s1770_s14 }
  0x55   : > { %p1995_p12 = por %p309_p4, %p123_p6  ;;  %p316_p0 = scmp.lt.s32.totalorder %s1778_s16, 3 }
  0x56   : > { %s2270_s26 = scalar_select %p1983_p5, 1, 0 }
  0x57   : > { %p1991_p11 = por %p303_p2, %p2271_p9  ;;  %p2000_p3 = pnand %p1317_p7, %p316_p0 }
  0x58   : > { %s2273_s25 = scalar_select %p1995_p12, 1, 0 }
  0x59   : > { %s2272_s3 = scalar_select %p1991_p11, 1, 0 }
  0x5a   : > { %2274 = sst [smem:[#allocation20_spill]] %s2273_s25  ;;  %s1782_s21 = smov [#allocation2]  }
  0x5b   : > { %s2275_s12 = scalar_select %p2000_p3, 1, 0 }
  0x5c   : > { %s329_s23 = sshll.u32 %s1782_s21, 4  ;;  %s375_s11 = scalar_lea.vmem [#allocation7], %s1887_s22  ;;  %s2004_s23 = int_to_ptr.vmem [resolvable:$true] %s329_s23 }
  0x5d   : > { %s382_s27 = sshll.u32 %s375_s11, 4  ;;  %s1616_s19 = scalar_lea.hbm %s1941_s28, 16  ;;  %s383_s27 = int_to_ptr.vmem [resolvable:$true] %s382_s27 }
  0x5e   : > { %p1617_p6 = scmp.ne.s32.totalorder %s1941_s28, %s1616_s19  ;;  %s1621_s15 = scalar_lea.hbm %s2266_s4, 32 }
  0x5f   : > { %p1622_p7 = scmp.lt.u32.totalorder %s1941_s28, %s2266_s4  ;;  %p1623_p9 = scmp.lt.u32.totalorder %s1621_s15, %s1616_s19 }
  0x60   : > { %p1619_p2 = pnand %p1617_p6, %p1912_p8  ;;  %p1625_p10 = scmp.lt.u32.totalorder %s1616_s19, %s1941_s28 }
  0x61   : > { %p1624_p0 = por %p1623_p9, %p1622_p7 }
  0x62   : > { %p1620_p4 = pneg %p1619_p2 }
  0x63   : > { %p1626_p12 = por %p1625_p10, %p1624_p0 }
  0x65   : > { %p1627_p11 = pnand %p1626_p12, %p1620_p4 }
  0x67   : > { %1630 = shalt.err (!%p1627_p11)
}
  0x68   : > { %s1631_s21 = scalar_lea.vmem %s383_s27, 16  ;;  %s1783_s11 = smov [#allocation7]  }
  0x69   : > { %p1632_p1 = scmp.ne.s32.totalorder %s383_s27, %s1631_s21  ;;  %s1636_s10 = sshll.u32 %s1783_s11, 4  ;;  %s1637_s10 = int_to_ptr.vmem [resolvable:$false] %s1636_s10 }
  0x6a   : > { %s1638_s5 = scalar_lea.vmem %s1637_s10, 32  ;;  %p1639_p5 = scmp.lt.s32.totalorder %s383_s27, %s1637_s10 }
  0x6b   : > { %p1634_p6 = pnand %p1632_p1, %p1912_p8  ;;  %p1640_p3 = scmp.lt.s32.totalorder %s1638_s5, %s1631_s21 }
  0x6d   : > { %p1635_p2 = pneg %p1634_p6  ;;  %p1641_p13 = por %p1640_p3, %p1639_p5 }
  0x6f   : > { %p1642_p7 = pnand %p1641_p13, %p1635_p2 }
  0x71   : > { %1645 = shalt.err (!%p1642_p7)
}
  0x72   : > { %p2276_p9 = scmp.ne.s32.totalorder %s2264_s30, 0  ;;  %p2277_p10 = scmp.eq.s32.totalorder %s1974_s20, 0 }
  0x73   : > { %p2278_p11 = scmp.ne.s32.totalorder %s2275_s12, 0  ;;  %s1357_s10 = sshll.u32 %s1778_s16, 9 }
  0x74   : > { %1485 = dma.hbm_to_vmem [thread:$0]  (!%p2276_p9), %s1941_s28, 16, %s383_s27, %s1906_s18  }
  0x75   : > { %p2279_p12 = pneg %p2278_p11  ;;  %s2281_s15 = sshll.u32 %s1887_s22, 5 }
  0x76   : > { %s418_s25 = scalar_lea.vmem [#allocation10], %s2281_s15  ;;  %s2042_s11 = scalar_lea.hbm %s2234_s7, %s1357_s10 }
  0x77   : > { %p2032_p1 = pnand %p2279_p12, %p2277_p10  ;;  %s425_s19 = sshll.u32 %s418_s25, 4  ;;  %s2065_s19 = int_to_ptr.vmem [resolvable:$true] %s425_s19 }
  0x78   : > { %s1646_s18 = scalar_lea.hbm %s2227_s0, 128 }
  0x79   : > { %p1647_p13 = scmp.ne.s32.totalorder %s2227_s0, %s1646_s18  ;;  %p1648_p5 = pneg %p2032_p1 }
  0x7a   : > { %p1653_p0 = scmp.lt.u32.totalorder %s1646_s18, %s2227_s0 }
  0x7b   : > { %p1649_p3 = pnand %p1648_p5, %p1647_p13 }
  0x7d   : > { %p1650_p4 = pneg %p1649_p3 }
  0x7f   : > { %p1655_p6 = pnand %p1653_p0, %p1650_p4 }
  0x81   : > { %1658 = shalt.err (!%p1655_p6)
}
  0x82   : > { %s1659_s10 = scalar_lea.vmem %s2004_s23, 128  ;;  %p1667_p12 = scmp.lt.s32.totalorder %s2004_s23, %s2004_s23 }
  0x83   : > { %p1660_p2 = scmp.ne.s32.totalorder %s2004_s23, %s1659_s10  ;;  %p1668_p11 = scmp.lt.s32.totalorder %s1659_s10, %s1659_s10 }
  0x85   : > { %p1662_p7 = pnand %p1660_p2, %p1648_p5  ;;  %p1669_p9 = por %p1668_p11, %p1667_p12 }
  0x87   : > { %p1663_p10 = pneg %p1662_p7 }
  0x89   : > { %p1670_p8 = pnand %p1669_p9, %p1663_p10 }
  0x8b   : > { %1673 = shalt.err (!%p1670_p8)
}
  0x8c   : > { %1478 = dma.hbm_to_vmem [thread:$0]  (!%p2032_p1), %s2227_s0, 128, %s2004_s23, [#allocation3]  }
  0x8d   : > { %s1674_s17 = scalar_lea.hbm %s2042_s11, 512  ;;  %p2282_p5 = scmp.ne.s32.totalorder %s2265_s24, 0 }
  0x8e   : > { %p1675_p13 = scmp.ne.s32.totalorder %s2042_s11, %s1674_s17  ;;  %s1679_s13 = scalar_lea.hbm %s2234_s7, 1024 }
  0x8f   : > { %p1680_p8 = scmp.lt.u32.totalorder %s2042_s11, %s2234_s7  ;;  %p1681_p3 = scmp.lt.u32.totalorder %s1679_s13, %s1674_s17 }
  0x90   : > { %p1677_p11 = pnand %p1675_p13, %p2282_p5  ;;  %p1683_p0 = scmp.lt.u32.totalorder %s1674_s17, %s2042_s11 }
  0x91   : > { %p1682_p4 = por %p1681_p3, %p1680_p8 }
  0x92   : > { %p1678_p9 = pneg %p1677_p11 }
  0x93   : > { %p1684_p6 = por %p1683_p0, %p1682_p4 }
  0x95   : > { %p1685_p1 = pnand %p1684_p6, %p1678_p9 }
  0x97   : > { %1688 = shalt.err (!%p1685_p1)
}
  0x98   : > { %s1689_s23 = scalar_lea.vmem %s2065_s19, 512  ;;  %s1784_s27 = smov [#allocation10]  }
  0x99   : > { %p1690_p2 = scmp.ne.s32.totalorder %s2065_s19, %s1689_s23  ;;  %s1694_s22 = sshll.u32 %s1784_s27, 4  ;;  %s1695_s22 = int_to_ptr.vmem [resolvable:$false] %s1694_s22 }
  0x9a   : > { %s1696_s15 = scalar_lea.vmem %s1695_s22, 1024  ;;  %p1697_p12 = scmp.lt.s32.totalorder %s2065_s19, %s1695_s22 }
  0x9b   : > { %p1692_p7 = pnand %p1690_p2, %p2282_p5  ;;  %p1698_p13 = scmp.lt.s32.totalorder %s1696_s15, %s1689_s23 }
  0x9d   : > { %p1693_p10 = pneg %p1692_p7  ;;  %p1699_p11 = por %p1698_p13, %p1697_p12 }
  0x9f   : > { %p1700_p8 = pnand %p1699_p11, %p1693_p10 }
  0xa1   : > { %1703 = shalt.err (!%p1700_p8)
}
  0xa2   : > { %s1785_s10 = smov 128   ;;  %s1786_s4 = smov 8  }
  0xa3   : > { %p2283_p9 = scmp.ne.s32.totalorder %s2264_s30, 0  ;;  %p2284_p5 = scmp.ne.s32.totalorder %s2275_s12, 0 }
  0xa4   : > { %p2285_p3 = scmp.eq.s32.totalorder (!%p2284_p5), %s1974_s20, 0 }
  0xa5   : > { %1491 = dma.hbm_to_vmem [thread:$0]  (!%p2283_p9), %s2042_s11, 512, %s2065_s19, %s1953_s29, %s1785_s10, %s1785_s10, %s1786_s4  }
  0xa6   : > { %453 = sbr.rel (%p2284_p5) target bundleno = 1394 (0x572), region = 60 }
  0xad   : > { %1749 = dma.done.wait (%p2285_p3), [#allocation3], 128   ;;  %p2286_p4 = pmov %p2285_p3 }
  0xae   : > { %s459_s24 = sand.u32 1, %s1974_s20   ;;  %s2097_s25 = sand.u32 1, %s1770_s14  }
  0xaf   : > { %1751 = vsyncadd (%p2286_p4), [#allocation3], 4294967168  ;;  %s1329_s17 = sshll.u32 %s2097_s25, 3  ;;  %s460_s30 = scalar_lea.sflag [#allocation6], %s459_s24 }
  0xb0   : > { %s2102_s29 = scalar_lea.vmem [#allocation5], %s1329_s17  ;;  %p2287_p0 = scmp.ne.s32.totalorder %s2270_s26, 0 }
  0xb2   : > { %1753 = dma.done.wait (%p2287_p0), %s460_s30, 144  }
  0xb3   : > { %1755 = vsyncadd (%p2287_p0), %s460_s30, 4294967152  ;;  %s471_s12 = scalar_lea.vmem [#allocation7], %s2097_s25  ;;  %s477_s19 = scalar_lea.sflag [#allocation9], %s459_s24 }
  0xb4   : > { %s479_s11 = scalar_lea.vmem [#allocation8], %s2097_s25 }
  0xb5   : > { %1757 = dma.done.wait (%p2287_p0), %s477_s19, 528  }
  0xb6   : > { %1759 = vsyncadd (%p2287_p0), %s477_s19, 4294966768  ;;  %p561_p6 = scmp.lt.s32.totalorder %s1974_s20, 1  ;;  %v1787_v0 = vmov 0.0|0.0   ;;  %vm1788_vm0 = vmmov 0   ;;  %v1789_v1 = vmov 0.0   ;;  %v584_v5 = vld [vmem:[#allocation2] sm:$0xff] }
  0xb7   : > { %1437 = vmatprep.subr.bf16.mxu0 %v1787_v0  ;;  %1389 = vmatprep.mubr.msk.f32.mxu0 %vm1788_vm0, %v1789_v1  ;;  %s1790_s28 = smov 120   ;;  %vm594_vm1 = vcmask 130048   ;;  %v675_v6 = vld [vmem:[%s2102_s29] sm:$0xff]  ;;  %vm678_vm2 = vcmask 64512   ;;  %v1347_v14 = vld [vmem:[%s479_s11] ss:$0 sm:$0xff] }
  0xb8   : > { %s2119_s21 = scalar_select %p561_p6, %s1974_s20, 1  ;;  %1392 = vmatprep.subr.mxu1 %v1789_v1  ;;  %1394 = vmatprep.mubr.msk.f32.mxu1 %vm1788_vm0, %v1789_v1  ;;  %v1344_v15 = vld [vmem:[%s471_s12] ss:$0 sm:$0xff]  ;;  %vm767_vm3 = vcmask 261120  }
  0xb9   : > { %676 = vrot.lane.b32.xlu0 %v584_v5, %s1790_s28  ;;  %1393 = vmatpush3.msra.mxu1 %v675_v6  ;;  %s1791_s10 = smov 96   ;;  %s1330_s29 = sshll.u32 %s2097_s25, 5 }
  0xba   : > { %s1358_s26 = sshll.u32 %s2119_s21, 4  ;;  %s1359_s23 = sshll.u32 %s2119_s21, 5  ;;  %1440 = vmatprep.subr.bf16.mxu1 %v1787_v0  ;;  %1024 = vrot.lane.b32.xlu1 %v1347_v14, %s1791_s10 }
  0xbb   : > { %s565_s18 = scalar_lea.vmem %s2228_s1, %s1358_s26  ;;  %s573_s15 = scalar_lea.vmem %s2233_s6, %s1359_s23 }
  0xbc   : > { %v585_v2 = vld [vmem:[%s565_s18] sm:$0xff]  ;;  %v586_v3 = vld [vmem:[%s565_s18 + $0x8] sm:$0xff]  ;;  %v755_v10 = vld [vmem:[%s573_s15 + $0x10] sm:$0xff]  ;;  %s568_s30 = scalar_lea.vmem %s2229_s2, %s2119_s21  ;;  %s488_s12 = scalar_lea.vmem [#allocation10], %s1330_s29 }
  0xbd   : > { %v1438_v4 = vpack.c.bf16 %v586_v3, %v585_v2  ;;  %v753_v7 = vld [vmem:[%s573_s15] sm:$0xff]  ;;  %v754_v8 = vld [vmem:[%s573_s15 + $0x8] sm:$0xff]  ;;  %v756_v11 = vld [vmem:[%s573_s15 + $0x18] sm:$0xff]  ;;  %941 = vrot.lane.b32.xlu0 %v1344_v15, %s1791_s10  ;;  %s578_s5 = scalar_lea.vmem %s2235_s8, %s1359_s23  ;;  %s583_s28 = scalar_lea.vmem %s2236_s9, %s1358_s26 }
  0xbe   : > { %v1441_v9 = vpack.c.bf16 %v754_v8, %v753_v7  ;;  %v1444_v13 = vpack.c.bf16 %v756_v11, %v755_v10  ;;  %v1340_v16 = vld [vmem:[%s568_s30] ss:$0 sm:$0xff]  ;;  %v758_v28 = vld [vmem:[%s488_s12 + $0x8] sm:$0xff]  ;;  %v759_v30 = vld [vmem:[%s488_s12 + $0x10] sm:$0xff]  ;;  %s1354_s21 = sshll.u32 %s1974_s20, 7  ;;  %s560_s26 = scalar_lea.vmem [#allocation11], %s1329_s17 }
  0xbf   : > { %1439 = vmatpush3.bf16.msra.mxu0 %v1438_v4  ;;  %v757_v27 = vld [vmem:[%s488_s12] sm:$0xff]  ;;  %v760_v31 = vld [vmem:[%s488_s12 + $0x18] sm:$0xff]  ;;  %v936_v42 = vld [vmem:[%s578_s5 + $0x8] sm:$0xff]  ;;  %s1120_s23 = sshll.u32 %s560_s26, 4  ;;  %s2288_s15 = sld [smem:[#allocation24_spill]]  ;;  %s2184_s23 = int_to_ptr.vmem [resolvable:$true] %s1120_s23 }
  0xc0   : > { %1446 = vmatprep.subr.bf16.mxu0 %v1787_v0  ;;  %v1447_v29 = vpack.c.bf16 %v758_v28, %v757_v27  ;;  %v1450_v32 = vpack.c.bf16 %v760_v31, %v759_v30  ;;  %v935_v41 = vld [vmem:[%s578_s5] sm:$0xff]  ;;  %v937_v44 = vld [vmem:[%s578_s5 + $0x10] sm:$0xff]  ;;  %v938_v45 = vld [vmem:[%s578_s5 + $0x18] sm:$0xff]  ;;  %s1107_s20 = scalar_lea.sflag [#allocation4], %s2097_s25  ;;  %s1704_s24 = scalar_lea.vmem %s2184_s23, 128 }
  0xc1   : > { %v1453_v43 = vpack.c.bf16 %v936_v42, %v935_v41  ;;  %v1456_v46 = vpack.c.bf16 %v938_v45, %v937_v44  ;;  %v939_v56 = vld [vmem:[%s583_s28] sm:$0xff]  ;;  %v940_v57 = vld [vmem:[%s583_s28 + $0x8] sm:$0xff]  ;;  %p1705_p1 = scmp.ne.s32.totalorder %s2184_s23, %s1704_s24  ;;  %p2290_p2 = scmp.ne.s32.totalorder %s2272_s3, 0 }
  0xc2   : > { %1390 = vmatmul.mubr.msk.f32.vlgmr.msra.gmra.mrb[0].mxu0 %vm594_vm1, %v584_v5  ;;  %v1459_v58 = vpack.c.bf16 %v940_v57, %v939_v56  ;;  %s1792_s17 = smov [#allocation11]  }
  0xc3   : > { %1416 = vmatprep.mubr.msk.f32.mxu0 %vm1788_vm0, %v1789_v1  ;;  %1448 = vmatpush3.bf16.msra.mxu0 %v1447_v29  ;;  %p1706_p7 = pnand %p1705_p1, %p2290_p2  ;;  %s1708_s30 = sshll.u32 %s1792_s17, 4  ;;  %s1709_s30 = int_to_ptr.vmem [resolvable:$false] %s1708_s30 }
  0xc4   : > { %1449 = vmatprep.subr.bf16.mxu0 %v1787_v0  ;;  %s1710_s29 = scalar_lea.vmem %s1709_s30, 256  ;;  %p1711_p12 = scmp.lt.s32.totalorder %s2184_s23, %s1709_s30 }
  0xc5   : > { %s2182_s4 = scalar_lea.hbm %s2288_s15, %s1354_s21  ;;  %p1707_p10 = pneg %p1706_p7 }
  0xc6   : > { %p1712_p13 = scmp.lt.s32.totalorder %s1710_s29, %s1704_s24 }
  0xc7   : > { %1451 = vmatpush3.bf16.msra.mxu0 %v1450_v32 }
  0xc8   : > { %1458 = vmatprep.subr.bf16.mxu0 %v1787_v0  ;;  %p1713_p11 = por %p1712_p13, %p1711_p12 }
  0xca   : > { %p1714_p8 = pnand %p1713_p11, %p1707_p10 }
 0x12b   : > { %v677_v12 = vpop.permute.xlu0 %676 }
 0x12c   : > { %1395 = vmatmul.mubr.msk.f32.vlgmr.msra.gmra.mrb[0].mxu1 %vm678_vm2, %v677_v12  ;;  %v1025_v4 = vpop.permute.xlu1 %1024 }
 0x12d   : > { %1442 = vmatpush3.bf16.msra.mxu1 %v1441_v9  ;;  %1405 = vmatprep.mubr.msk.f32.mxu1 %vm1788_vm0, %v1789_v1 }
 0x12e   : > { %1443 = vmatprep.subr.bf16.mxu1 %v1787_v0 }
 0x12f   : > { %v942_v59 = vpop.permute.xlu0 %941 }
 0x131   : > { %1445 = vmatpush3.bf16.msra.mxu1 %v1444_v13 }
 0x132   : > { %1452 = vmatprep.subr.bf16.mxu1 %v1787_v0 }
 0x195   : > { %v664_v17 = vpop.f32.mrb[0].mxu0 }
 0x196   : > { %v665_v18 = vadd.f32 %v1340_v16, %v664_v17  ;;  %v1391_v19 = vpop.f32.mrb[1].mxu0 }
 0x198   : > { %v1342_v20 = vmul.f32 -1.442695, %v665_v18 }
 0x19a   : > { %1540 = vpow2.f32 %v1342_v20 }
 0x1a4   : > { %v1541_v21 = vpop.eup %1540 }
 0x1a5   : > { %v671_v22 = vadd.f32 1.0, %v1541_v21 }
 0x1a7   : > { %1542 = vrcp.f32 %v671_v22 }
 0x1b1   : > { %v1543_v23 = vpop.eup %1542 }
 0x1b2   : > { %v674_v24 = vmul.f32 %v1543_v23, %v665_v18 }
 0x1b4   : > { %1406 = vmatmul.mubr.msk.f32.vlgmr.msra.gmra.mrb[2].mxu1 %vm767_vm3, %v674_v24 }
 0x1b5   : > { %1427 = vmatprep.mubr.msk.f32.mxu1 %vm1788_vm0, %v1789_v1  ;;  %1454 = vmatpush3.bf16.msra.mxu1 %v1453_v43 }
 0x1b6   : > { %1455 = vmatprep.subr.bf16.mxu1 %v1787_v0 }
 0x1b9   : > { %1457 = vmatpush3.bf16.msra.mxu1 %v1456_v46 }
 0x1ff   : > { %v747_v25 = vpop.f32.mrb[0].mxu1 }
 0x200   : > { %v1396_v26 = vpop.f32.mrb[1].mxu1  ;;  %1101 = vrot.lane.b32.xlu1 %v747_v25, %s1791_s10  ;;  %s2289_s10 = smov %s2288_s15 }
 0x272   : > { %v1102_v8 = vpop.permute.xlu1 %1101 }
 0x287   : > { %v837_v33 = vpop.f32.mrb[2].mxu1 }
 0x288   : > { %v838_v34 = vadd.f32 %v1344_v15, %v837_v33  ;;  %v1407_v35 = vpop.f32.mrb[3].mxu1 }
 0x28a   : > { %v1346_v36 = vmul.f32 -1.442695, %v838_v34 }
 0x28c   : > { %1544 = vpow2.f32 %v1346_v36 }
 0x296   : > { %v1545_v37 = vpop.eup %1544 }
 0x297   : > { %v844_v38 = vadd.f32 1.0, %v1545_v37 }
 0x299   : > { %1546 = vrcp.f32 %v844_v38 }
 0x2a3   : > { %v1547_v39 = vpop.eup %1546 }
 0x2a4   : > { %v847_v40 = vmul.f32 %v1547_v39, %v838_v34 }
 0x2a6   : > { %1417 = vmatmul.mubr.msk.f32.vlgmr.msra.gmra.mrb[2].mxu0 %vm767_vm3, %v847_v40 }
 0x2a7   : > { %1434 = vmatprep.mubr.msk.f32.mxu0 %vm1788_vm0, %v1789_v1  ;;  %1460 = vmatpush3.bf16.msra.mxu0 %v1459_v58 }
 0x379   : > { %v923_v47 = vpop.f32.mrb[2].mxu0 }
 0x37a   : > { %v924_v48 = vadd.f32 %v1347_v14, %v923_v47  ;;  %v1418_v49 = vpop.f32.mrb[3].mxu0 }
 0x37c   : > { %v927_v50 = vadd.f32 %v924_v48, %v747_v25 }
 0x37e   : > { %v1349_v51 = vmul.f32 -1.442695, %v927_v50 }
 0x380   : > { %1548 = vpow2.f32 %v1349_v51 }
 0x38a   : > { %v1549_v52 = vpop.eup %1548 }
 0x38b   : > { %v931_v53 = vadd.f32 1.0, %v1549_v52 }
 0x38d   : > { %1550 = vrcp.f32 %v931_v53 }
 0x397   : > { %v1551_v54 = vpop.eup %1550 }
 0x398   : > { %v934_v55 = vmul.f32 %v1551_v54, %v927_v50 }
 0x39a   : > { %1428 = vmatmul.mubr.msk.f32.vlgmr.msra.gmra.mrb[4].mxu1 %vm767_vm3, %v934_v55 }
 0x46d   : > { %v1013_v60 = vpop.f32.mrb[4].mxu1 }
 0x46e   : > { %v1014_v61 = vadd.f32 %v1013_v60, %v942_v59  ;;  %v1429_v62 = vpop.f32.mrb[5].mxu1 }
 0x470   : > { %v1351_v63 = vmul.f32 -1.442695, %v1014_v61 }
 0x472   : > { %1552 = vpow2.f32 %v1351_v63 }
 0x47c   : > { %v1553_v0 = vpop.eup %1552 }
 0x47d   : > { %v1020_v1 = vadd.f32 1.0, %v1553_v0 }
 0x47f   : > { %1554 = vrcp.f32 %v1020_v1 }
 0x489   : > { %v1555_v2 = vpop.eup %1554 }
 0x48a   : > { %v1023_v3 = vmul.f32 %v1555_v2, %v1014_v61 }
 0x48c   : > { %1435 = vmatmul.mubr.msk.f32.vlgmr.msra.gmra.mrb[4].mxu0 %vm594_vm1, %v1023_v3 }
 0x55f   : > { %v1096_v5 = vpop.f32.mrb[4].mxu0 }
 0x560   : > { %v1097_v6 = vadd.f32 %v1096_v5, %v1025_v4  ;;  %v1436_v7 = vpop.f32.mrb[5].mxu0 }
 0x562   : > { %v1104_v9 = vadd.f32 %v1102_v8, %v1097_v6 }
 0x564   : > { %1105 = vst.msk [vmem:[%s560_s26] sm:$0xff] %vm594_vm1, %v1104_v9 }
 0x565   : > { %1717 = shalt.err (!%p1714_p8)
}
 0x566   : > { %s1718_s25 = scalar_lea.hbm %s2182_s4, 128  ;;  %s1722_s11 = scalar_lea.hbm %s2289_s10, 256 }
 0x567   : > { %p1719_p9 = scmp.ne.s32.totalorder %s2182_s4, %s1718_s25  ;;  %p1723_p4 = scmp.lt.u32.totalorder %s2182_s4, %s2289_s10 }
 0x568   : > { %p1724_p0 = scmp.lt.u32.totalorder %s1722_s11, %s1718_s25  ;;  %p1726_p1 = scmp.lt.u32.totalorder %s1718_s25, %s2182_s4 }
 0x569   : > { %p1720_p5 = pnand %p1719_p9, %p2290_p2 }
 0x56a   : > { %p1725_p6 = por %p1724_p0, %p1723_p4 }
 0x56b   : > { %p1721_p3 = pneg %p1720_p5 }
 0x56c   : > { %p1727_p7 = por %p1726_p1, %p1725_p6 }
 0x56e   : > { %p1728_p10 = pnand %p1727_p7, %p1721_p3 }
 0x570   : > { %1731 = shalt.err (!%p1728_p10)
}
 0x571   : > { %1473 = dma.vmem_to_hbm [thread:$0]  (%p2290_p2), %s2184_s23, 128, %s2182_s4, %s1107_s20  }
 0x572 PF: > { %s2291_s18 = sld [smem:[#allocation16_spill]]  ;;  %s2292_s28 = sld [smem:[#allocation20_spill]] }
 0x573   : > { %p2294_p13 = scmp.ge.s32.totalorder %s1778_s16, 2 }
 0x578   : > { %s1132_s21 = sand.u32 1, %s2291_s18   ;;  %p2293_p12 = scmp.ne.s32.totalorder %s2292_s28, 0 }
 0x579   : > { %s1133_s26 = scalar_lea.sflag [#allocation4], %s1132_s21 }
 0x57a   : > { %p1493_p11 = pnand %p2294_p13, %p2293_p12 }
 0x57c   : > { %1761 = dma.done.wait (!%p1493_p11), %s1133_s26, 128  }
 0x57d   : > { %1763 = vsyncadd (!%p1493_p11), %s1133_s26, 4294967168  ;;  %s2295_s16 = sld [smem:[#allocation18_spill]]  ;;  %s2296_s27 = sld [smem:[#allocation17_spill]] }
 0x57e   : > { %s2297_s15 = sld [smem:[#allocation19_spill]]  ;;  %s2298_s13 = smov %s1770_s14 }
 0x583   : > { %p27_p8 = scmp.ge.s32.totalorder %s2295_s16, 4   ;;  %s2299_s14 = smov %s2296_s27 }
 0x585   :  { %29 = sbr.rel (!%p27_p8) target bundleno = 13 (0xd), region = 160 }
 0x58c   :  { %1138 = vsyncpa [#allocation3], 1 }
 0x58d   :  { %1140 = vsyncpa [#allocation3 + $0x1], 1 }
 0x58e   :  { %1141 = vsyncpa [#allocation6], 1 }
 0x58f   :  { %1143 = vsyncpa [#allocation6 + $0x1], 1 }
 0x590   :  { %1144 = vsyncpa [#allocation9], 1 }
 0x591   :  { %1146 = vsyncpa [#allocation9 + $0x1], 1 }
 0x592   :  { %1147 = vsyncpa [#allocation4], 1 }
 0x593   :  { %1149 = vsyncpa [#allocation4 + $0x1], 1 }

</bundles_post_ra>
